<compile_context>
chip_gen: v7x
topology: tpu7x:2x2x1
jax: 0.10.0
libtpu: 0.0.40
codegen_flags: <defaults>
</compile_context>

<pallas_src>
import functools
import math

import jax
import jax.numpy as jnp
from jax.experimental import pallas as pl
from jax.experimental.pallas import tpu as pltpu

LANE = 128     # vreg lane width (last dim)
SUBLANE = 8    # vreg sublane width (second-to-last dim)


def _round_up(n, m):
    return ((n + m - 1) // m) * m


def simple_nn_kernel(x_ref, w1_ref, b1_ref, w2_ref, b2_ref, w3_ref, b3_ref,
                     out_ref, *, compute_dtype):
    """Fused MLP forward for one batch tile:
       relu(relu(x@W1+b1)@W2+b2)@W3+b3, fp32 accumulation."""
    x = x_ref[...]

    def dot(a, w_ref):
        # Optionally feed bf16 operands to the MXU; always accumulate in fp32.
        return jnp.dot(a.astype(compute_dtype),
                       w_ref[...].astype(compute_dtype),
                       preferred_element_type=jnp.float32)

    # Elementwise math (bias add, ReLU) stays in fp32 (v5e has no bf16 VPU).
    h1 = jnp.maximum(dot(x, w1_ref) + b1_ref[...], 0.0)
    h2 = jnp.maximum(dot(h1, w2_ref) + b2_ref[...], 0.0)
    out = dot(h2, w3_ref) + b3_ref[...]

    out_ref[...] = out.astype(out_ref.dtype)


def simple_nn_forward(x, params, *, block_batch=512,
                      compute_dtype=jnp.float32):
    """Run the fused, batch-tiled Pallas kernel.

    x:      (batch, input_size) float32
    params: list of (W, b) with W shaped (in, out) and b shaped (1, out)
    """
    (w1, b1), (w2, b2), (w3, b3) = params
    batch, in_features = x.shape
    out_features = w3.shape[1]

    # ---- pad every feature dim to a lane multiple (128) -> unmasked vld/vst.
    in_p = _round_up(in_features, LANE)
    h1_p = _round_up(w1.shape[1], LANE)
    h2_p = _round_up(w2.shape[1], LANE)
    out_p = _round_up(out_features, LANE)

    # ---- batch tile: large to amortize per-grid-step overhead, but never
    # larger than (rounded-up) batch; padded batch is a multiple of the tile.
    tb = _round_up(min(block_batch, _round_up(batch, SUBLANE)), SUBLANE)
    batch_p = _round_up(batch, tb)
    grid = (batch_p // tb,)

    def pad2(a, rows, cols):
        return jnp.pad(a, ((0, rows - a.shape[0]), (0, cols - a.shape[1])))

    x_p = pad2(x, batch_p, in_p)
    w1_p, b1_p = pad2(w1, in_p, h1_p), pad2(b1, 1, h1_p)
    w2_p, b2_p = pad2(w2, h1_p, h2_p), pad2(b2, 1, h2_p)
    w3_p, b3_p = pad2(w3, h2_p, out_p), pad2(b3, 1, out_p)

    # Weights/biases: constant block index -> stay resident in VMEM across
    # all batch tiles (single DMA each).
    resident = lambda a: pl.BlockSpec(a.shape, lambda i: (0, 0))

    param_bytes = sum(int(a.size) * a.dtype.itemsize
                      for a in (w1_p, b1_p, w2_p, b2_p, w3_p, b3_p))
    bytes_accessed = (int(x_p.size) * x_p.dtype.itemsize
                      + batch_p * out_p * 4 + param_bytes)
    flops = 2 * batch_p * (in_p * h1_p + h1_p * h2_p + h2_p * out_p)

    kernel = functools.partial(simple_nn_kernel, compute_dtype=compute_dtype)

    out_padded = pl.pallas_call(
        kernel,
        out_shape=jax.ShapeDtypeStruct((batch_p, out_p), jnp.float32),
        grid=grid,
        in_specs=[pl.BlockSpec((tb, in_p), lambda i: (i, 0)),
                  resident(w1_p), resident(b1_p),
                  resident(w2_p), resident(b2_p),
                  resident(w3_p), resident(b3_p)],
        out_specs=pl.BlockSpec((tb, out_p), lambda i: (i, 0)),
        compiler_params=pltpu.CompilerParams(
            dimension_semantics=("parallel",)),
        cost_estimate=pl.CostEstimate(flops=flops, transcendentals=0,
                                      bytes_accessed=bytes_accessed),
    )(x_p, w1_p, b1_p, w2_p, b2_p, w3_p, b3_p)

    # Drop batch/output padding (lane-dense slab was only for store efficiency).
    return out_padded[:batch, :out_features]


# Jitted entry point: fuses the wrapper-side pads / slice with the custom call
# so the whole forward is a single XLA program per (shape, dtype) signature.
simple_nn_forward_jit = jax.jit(
    simple_nn_forward, static_argnames=("block_batch", "compute_dtype"))


def init_params(key, input_size, hidden_sizes, output_size):
    """Deterministic init matching torch.nn.Linear default:
    U(-1/sqrt(fan_in), 1/sqrt(fan_in)) for both weight and bias.
    Weights are stored as (in, out) (i.e. torch weight transposed)."""
    sizes = [input_size] + list(hidden_sizes) + [output_size]
    params = []
    for i in range(len(sizes) - 1):
        fan_in, fan_out = sizes[i], sizes[i + 1]
        key, kw, kb = jax.random.split(key, 3)
        bound = 1.0 / math.sqrt(fan_in)
        w = jax.random.uniform(kw, (fan_in, fan_out), jnp.float32,
                               minval=-bound, maxval=bound)
        b = jax.random.uniform(kb, (1, fan_out), jnp.float32,
                               minval=-bound, maxval=bound)
        params.append((w, b))
    return params


def reference_forward(x, params):
    """Plain-JAX reference of the same forward pass."""
    h = x
    for w, b in params[:-1]:
        h = jnp.maximum(h @ w + b, 0.0)
    w, b = params[-1]
    return h @ w + b


if __name__ == "__main__":
    # Shapes implied by circles/moons classification: 2-D inputs, 2 classes.
    batch = 128           # small, but >1 batch tile so the grid is exercised
    input_size = 2
    hidden_sizes = [32, 32]
    output_size = 2
    block_batch = 64      # -> grid = (2,)

    key = jax.random.PRNGKey(0)
    key, kx = jax.random.split(key)
    x = jax.random.normal(kx, (batch, input_size), jnp.float32)

    params = init_params(key, input_size, hidden_sizes, output_size)
    ref = reference_forward(x, params)

    # fp32 MXU path (exact vs reference).
    out = jax.block_until_ready(
        simple_nn_forward_jit(x, params, block_batch=block_batch))
    assert out.shape == (batch, output_size)
    assert jnp.allclose(out, ref, atol=1e-5, rtol=1e-5), "fp32 mismatch"

    # bf16-operand / fp32-accumulate MXU fast path (v6e/v7x recommendation).
    out_bf16 = jax.block_until_ready(
        simple_nn_forward_jit(x, params, block_batch=block_batch,
                              compute_dtype=jnp.bfloat16))
    assert jnp.allclose(out_bf16, ref, atol=5e-2, rtol=5e-2), "bf16 mismatch"

    print("KERNEL_OK")
</pallas_src>

<mosaic_0001>
module attributes {stable_mosaic.version = 11 : i64} {
  func.func @simple_nn_kernel(%arg0: i32, %arg1: memref<64x128xf32, #tpu.memory_space<vmem>>, %arg2: memref<128x128xf32, #tpu.memory_space<vmem>>, %arg3: memref<1x128xf32, #tpu.memory_space<vmem>>, %arg4: memref<128x128xf32, #tpu.memory_space<vmem>>, %arg5: memref<1x128xf32, #tpu.memory_space<vmem>>, %arg6: memref<128x128xf32, #tpu.memory_space<vmem>>, %arg7: memref<1x128xf32, #tpu.memory_space<vmem>>, %arg8: memref<64x128xf32, #tpu.memory_space<vmem>>) attributes {dimension_semantics = [#tpu.dimension_semantics<parallel>], iteration_bounds = array<i64: 2>, scalar_prefetch = 0 : i64, scratch_operands = 0 : i64, tpu.core_type = #tpu.core_type<tc>, window_params = [{transform_indices = @transform_0, window_bounds = array<i64: 64, 128>}, {pipeline_mode = #tpu.pipeline_mode<synchronous>, transform_indices = @transform_1, window_bounds = array<i64: 128, 128>}, {pipeline_mode = #tpu.pipeline_mode<synchronous>, transform_indices = @transform_2, window_bounds = array<i64: 1, 128>}, {pipeline_mode = #tpu.pipeline_mode<synchronous>, transform_indices = @transform_3, window_bounds = array<i64: 128, 128>}, {pipeline_mode = #tpu.pipeline_mode<synchronous>, transform_indices = @transform_4, window_bounds = array<i64: 1, 128>}, {pipeline_mode = #tpu.pipeline_mode<synchronous>, transform_indices = @transform_5, window_bounds = array<i64: 128, 128>}, {pipeline_mode = #tpu.pipeline_mode<synchronous>, transform_indices = @transform_6, window_bounds = array<i64: 1, 128>}, {transform_indices = @transform_7, window_bounds = array<i64: 64, 128>}]} {
    %c0 = arith.constant 0 : index
    %c0_0 = arith.constant 0 : index
    %0 = vector.load %arg1[%c0, %c0_0] : memref<64x128xf32, #tpu.memory_space<vmem>>, vector<64x128xf32>
    %c0_1 = arith.constant 0 : index
    %c0_2 = arith.constant 0 : index
    %1 = vector.load %arg2[%c0_1, %c0_2] : memref<128x128xf32, #tpu.memory_space<vmem>>, vector<128x128xf32>
    %cst = arith.constant dense<0.000000e+00> : vector<64x128xf32>
    %2 = tpu.matmul %0, %1, %cst {dimension_numbers = #tpu.dot_dimension_numbers<[1], [0], [0], [1], [0, 0, 1, 1], [], []>} : vector<64x128xf32>, vector<128x128xf32>, vector<64x128xf32> -> vector<64x128xf32>
    %c0_3 = arith.constant 0 : index
    %c0_4 = arith.constant 0 : index
    %3 = vector.load %arg3[%c0_3, %c0_4] : memref<1x128xf32, #tpu.memory_space<vmem>>, vector<1x128xf32>
    %4 = vector.broadcast %3 : vector<1x128xf32> to vector<64x128xf32>
    %5 = arith.addf %2, %4 : vector<64x128xf32>
    %cst_5 = arith.constant 0.000000e+00 : f32
    %6 = vector.broadcast %cst_5 : f32 to vector<64x128xf32>
    %7 = arith.maximumf %5, %6 : vector<64x128xf32>
    %c0_6 = arith.constant 0 : index
    %c0_7 = arith.constant 0 : index
    %8 = vector.load %arg4[%c0_6, %c0_7] : memref<128x128xf32, #tpu.memory_space<vmem>>, vector<128x128xf32>
    %cst_8 = arith.constant dense<0.000000e+00> : vector<64x128xf32>
    %9 = tpu.matmul %7, %8, %cst_8 {dimension_numbers = #tpu.dot_dimension_numbers<[1], [0], [0], [1], [0, 0, 1, 1], [], []>} : vector<64x128xf32>, vector<128x128xf32>, vector<64x128xf32> -> vector<64x128xf32>
    %c0_9 = arith.constant 0 : index
    %c0_10 = arith.constant 0 : index
    %10 = vector.load %arg5[%c0_9, %c0_10] : memref<1x128xf32, #tpu.memory_space<vmem>>, vector<1x128xf32>
    %11 = vector.broadcast %10 : vector<1x128xf32> to vector<64x128xf32>
    %12 = arith.addf %9, %11 : vector<64x128xf32>
    %cst_11 = arith.constant 0.000000e+00 : f32
    %13 = vector.broadcast %cst_11 : f32 to vector<64x128xf32>
    %14 = arith.maximumf %12, %13 : vector<64x128xf32>
    %c0_12 = arith.constant 0 : index
    %c0_13 = arith.constant 0 : index
    %15 = vector.load %arg6[%c0_12, %c0_13] : memref<128x128xf32, #tpu.memory_space<vmem>>, vector<128x128xf32>
    %cst_14 = arith.constant dense<0.000000e+00> : vector<64x128xf32>
    %16 = tpu.matmul %14, %15, %cst_14 {dimension_numbers = #tpu.dot_dimension_numbers<[1], [0], [0], [1], [0, 0, 1, 1], [], []>} : vector<64x128xf32>, vector<128x128xf32>, vector<64x128xf32> -> vector<64x128xf32>
    %c0_15 = arith.constant 0 : index
    %c0_16 = arith.constant 0 : index
    %17 = vector.load %arg7[%c0_15, %c0_16] : memref<1x128xf32, #tpu.memory_space<vmem>>, vector<1x128xf32>
    %18 = vector.broadcast %17 : vector<1x128xf32> to vector<64x128xf32>
    %19 = arith.addf %16, %18 : vector<64x128xf32>
    %c0_17 = arith.constant 0 : index
    %c0_18 = arith.constant 0 : index
    %20 = vector.load %arg8[%c0_17, %c0_18] : memref<64x128xf32, #tpu.memory_space<vmem>>, vector<64x128xf32>
    tpu.vector_store %arg8[%c0_17, %c0_18], %19 {strides = array<i32>} : memref<64x128xf32, #tpu.memory_space<vmem>>, vector<64x128xf32>,
    return
  }
  func.func @transform_0(%arg0: i32) -> (i32, i32) {
    %c0_i32 = arith.constant 0 : i32
    %c0_i32_0 = arith.constant 0 : i32
    return %arg0, %c0_i32 : i32, i32
  }
  func.func @transform_1(%arg0: i32) -> (i32, i32) {
    %c0_i32 = arith.constant 0 : i32
    %c0_i32_0 = arith.constant 0 : i32
    %c0_i32_1 = arith.constant 0 : i32
    return %c0_i32, %c0_i32_0 : i32, i32
  }
  func.func @transform_2(%arg0: i32) -> (i32, i32) {
    %c0_i32 = arith.constant 0 : i32
    %c0_i32_0 = arith.constant 0 : i32
    %c0_i32_1 = arith.constant 0 : i32
    return %c0_i32, %c0_i32_0 : i32, i32
  }
  func.func @transform_3(%arg0: i32) -> (i32, i32) {
    %c0_i32 = arith.constant 0 : i32
    %c0_i32_0 = arith.constant 0 : i32
    %c0_i32_1 = arith.constant 0 : i32
    return %c0_i32, %c0_i32_0 : i32, i32
  }
  func.func @transform_4(%arg0: i32) -> (i32, i32) {
    %c0_i32 = arith.constant 0 : i32
    %c0_i32_0 = arith.constant 0 : i32
    %c0_i32_1 = arith.constant 0 : i32
    return %c0_i32, %c0_i32_0 : i32, i32
  }
  func.func @transform_5(%arg0: i32) -> (i32, i32) {
    %c0_i32 = arith.constant 0 : i32
    %c0_i32_0 = arith.constant 0 : i32
    %c0_i32_1 = arith.constant 0 : i32
    return %c0_i32, %c0_i32_0 : i32, i32
  }
  func.func @transform_6(%arg0: i32) -> (i32, i32) {
    %c0_i32 = arith.constant 0 : i32
    %c0_i32_0 = arith.constant 0 : i32
    %c0_i32_1 = arith.constant 0 : i32
    return %c0_i32, %c0_i32_0 : i32, i32
  }
  func.func @transform_7(%arg0: i32) -> (i32, i32) {
    %c0_i32 = arith.constant 0 : i32
    %c0_i32_0 = arith.constant 0 : i32
    return %arg0, %c0_i32 : i32, i32
  }
}

</mosaic_0001>

<bundles_post_ra>
// kernel: simple_nn_forward.1
= control target key start
LH: loop header
LB: loop body
LE: loop exit
PB: predicated region body
PF: predicated region fallthrough
CT: control target
= control target key end

     0   :  { %s1140_s24 = smov 0   ;;  %s1327_s0 = inlined_call_operand.vmem [shape: f32[128,128], index: 0, kind: input, shape index: {}]   ;;  %s1328_s1 = inlined_call_operand.vmem [shape: f32[128,128], index: 1, kind: input, shape index: {}]   ;;  %s1329_s2 = inlined_call_operand.vmem [shape: f32[1,128], index: 2, kind: input, shape index: {}]   ;;  %s1330_s3 = inlined_call_operand.vmem [shape: f32[128,128], index: 3, kind: input, shape index: {}]   ;;  %s1331_s4 = inlined_call_operand.vmem [shape: f32[1,128], index: 4, kind: input, shape index: {}]   ;;  %s1332_s5 = inlined_call_operand.vmem [shape: f32[128,128], index: 5, kind: input, shape index: {}]   ;;  %s1333_s6 = inlined_call_operand.vmem [shape: f32[1,128], index: 6, kind: input, shape index: {}]   ;;  %s1334_s7 = inlined_call_operand.vmem [shape: f32[128,128], index: 7, kind: output, shape index: {}]  }
   0x1 LB: > { %s754_s25 = sadd.s32 4294967295, %s1098_s24   ;;  %p758_p0 = scmp.ge.s32.totalorder %s1098_s24, 1  ;;  %s1098_s24 = sphi %s1140_s24, %s17_s24  }
   0x2   : > { %p238_p1 = scmp.lt.s32.totalorder %s1098_s24, 3 }
   0x4   : > { %p239_p2 = pnand %p758_p0, %p238_p1 }
   0x5   : > { %v290_v0 = vld [vmem:[%s1328_s1] sm:$0xff] (!%p239_p2)  ;;  %v291_v1 = vld [vmem:[%s1328_s1 + $0x8] sm:$0xff] (!%p239_p2)  ;;  %v292_v2 = vld [vmem:[%s1328_s1 + $0x10] sm:$0xff] (!%p239_p2)  ;;  %s759_s9 = sshll.u32 (!%p239_p2), %s754_s25, 3 }
   0x6   : > { %242 = sbr.rel (%p239_p2) target bundleno = 704 (0x2c0), region = 48  ;;  %v972_v3 = vpack.c.bf16 (!%p239_p2), %v291_v1, %v290_v0  ;;  %v293_v4 = vld [vmem:[%s1328_s1 + $0x18] sm:$0xff] (!%p239_p2)  ;;  %p271_p3 = scmp.lt.s32.totalorder (!%p239_p2), %s759_s9, 15  ;;  %v294_v6 = vld [vmem:[%s1328_s1 + $0x20] sm:$0xff] (!%p239_p2)  ;;  %v295_v7 = vld [vmem:[%s1328_s1 + $0x28] sm:$0xff] (!%p239_p2) }
   0x7   : > { %v976_v5 = vpack.c.bf16 (!%p239_p2), %v293_v4, %v292_v2  ;;  %v980_v8 = vpack.c.bf16 (!%p239_p2), %v295_v7, %v294_v6  ;;  %v296_v9 = vld [vmem:[%s1328_s1 + $0x30] sm:$0xff] (!%p239_p2)  ;;  %v426_v10 = vld [vmem:[%s1330_s3] sm:$0xff] (!%p239_p2)  ;;  %v427_v11 = vld [vmem:[%s1330_s3 + $0x8] sm:$0xff] (!%p239_p2) }
   0x8   : > { %973 = vmatprep.subr.bf16.mxu0 (!%p239_p2), %v972_v3  ;;  %v297_v12 = vld [vmem:[%s1328_s1 + $0x38] sm:$0xff] (!%p239_p2)  ;;  %v1004_v13 = vpack.c.bf16 (!%p239_p2), %v427_v11, %v426_v10  ;;  %v428_v14 = vld [vmem:[%s1330_s3 + $0x10] sm:$0xff] (!%p239_p2)  ;;  %v430_v18 = vld [vmem:[%s1330_s3 + $0x20] sm:$0xff] (!%p239_p2) }
   0x9   : > { %975 = vmatpush3.bf16.msra.mxu0 (!%p239_p2), %v972_v3  ;;  %v429_v15 = vld [vmem:[%s1330_s3 + $0x18] sm:$0xff] (!%p239_p2)  ;;  %v984_v19 = vpack.c.bf16 (!%p239_p2), %v297_v12, %v296_v9  ;;  %v431_v20 = vld [vmem:[%s1330_s3 + $0x28] sm:$0xff] (!%p239_p2)  ;;  %v298_v21 = vld [vmem:[%s1328_s1 + $0x40] sm:$0xff] (!%p239_p2) }
   0xa   : > { %977 = vmatprep.subr.bf16.mxu0 (!%p239_p2), %v976_v5  ;;  %v1008_v17 = vpack.c.bf16 (!%p239_p2), %v429_v15, %v428_v14  ;;  %1005 = vmatprep.subr.bf16.mxu1 (!%p239_p2), %v1004_v13  ;;  %v299_v22 = vld [vmem:[%s1328_s1 + $0x48] sm:$0xff] (!%p239_p2)  ;;  %v1012_v23 = vpack.c.bf16 (!%p239_p2), %v431_v20, %v430_v18  ;;  %v432_v24 = vld [vmem:[%s1330_s3 + $0x30] sm:$0xff] (!%p239_p2)  ;;  %v433_v25 = vld [vmem:[%s1330_s3 + $0x38] sm:$0xff] (!%p239_p2) }
   0xb   : > { %1007 = vmatpush3.bf16.msra.mxu1 (!%p239_p2), %v1004_v13  ;;  %v988_v26 = vpack.c.bf16 (!%p239_p2), %v299_v22, %v298_v21  ;;  %v300_v27 = vld [vmem:[%s1328_s1 + $0x50] sm:$0xff] (!%p239_p2)  ;;  %v301_v28 = vld [vmem:[%s1328_s1 + $0x58] sm:$0xff] (!%p239_p2)  ;;  %v1016_v29 = vpack.c.bf16 (!%p239_p2), %v433_v25, %v432_v24  ;;  %v434_v30 = vld [vmem:[%s1330_s3 + $0x40] sm:$0xff] (!%p239_p2) }
   0xc   : > { %1009 = vmatprep.subr.bf16.mxu1 (!%p239_p2), %v1008_v17  ;;  %v435_v31 = vld [vmem:[%s1330_s3 + $0x48] sm:$0xff] (!%p239_p2)  ;;  %v992_v32 = vpack.c.bf16 (!%p239_p2), %v301_v28, %v300_v27  ;;  %v302_v33 = vld [vmem:[%s1328_s1 + $0x60] sm:$0xff] (!%p239_p2)  ;;  %v436_v36 = vld [vmem:[%s1330_s3 + $0x50] sm:$0xff] (!%p239_p2) }
   0xd   : > { %s1336_s9 = smov (!%p271_p3, %s759_s9), 15  ;;  %979 = vmatpush3.bf16.msra.mxu0 %v976_v5  ;;  %v303_v34 = vld [vmem:[%s1328_s1 + $0x68] sm:$0xff]  ;;  %v1020_v35 = vpack.c.bf16 %v435_v31, %v434_v30  ;;  %v437_v37 = vld [vmem:[%s1330_s3 + $0x58] sm:$0xff]  ;;  %v304_v39 = vld [vmem:[%s1328_s1 + $0x70] sm:$0xff] }
   0xe   : > { %s760_s18 = sshll.u32 %s1336_s9, 3  ;;  %981 = vmatprep.subr.bf16.mxu0 %v980_v8  ;;  %v996_v38 = vpack.c.bf16 %v303_v34, %v302_v33  ;;  %v305_v40 = vld [vmem:[%s1328_s1 + $0x78] sm:$0xff]  ;;  %v1024_v41 = vpack.c.bf16 %v437_v37, %v436_v36  ;;  %v438_v42 = vld [vmem:[%s1330_s3 + $0x60] sm:$0xff]  ;;  %v439_v43 = vld [vmem:[%s1330_s3 + $0x68] sm:$0xff] }
   0xf   : > { %s1186_s28 = scalar_lea.vmem %s1327_s0, %s760_s18  ;;  %1011 = vmatpush3.bf16.msra.mxu1 %v1008_v17  ;;  %v1000_v44 = vpack.c.bf16 %v305_v40, %v304_v39  ;;  %v1028_v45 = vpack.c.bf16 %v439_v43, %v438_v42  ;;  %v440_v53 = vld [vmem:[%s1330_s3 + $0x70] sm:$0xff]  ;;  %v441_v54 = vld [vmem:[%s1330_s3 + $0x78] sm:$0xff]  ;;  %v562_v56 = vld [vmem:[%s1332_s5] sm:$0xff]  ;;  %s280_s13 = scalar_lea.vmem %s1334_s7, %s760_s18 }
  0x10   : > { %v282_v16 = vld [vmem:[%s1186_s28] sm:$0xff]  ;;  %1013 = vmatprep.subr.bf16.mxu1 %v1012_v23  ;;  %v283_v46 = vld [vmem:[%s1186_s28 + $0x8] sm:$0xff]  ;;  %v284_v47 = vld [vmem:[%s1186_s28 + $0x10] sm:$0xff]  ;;  %v1032_v55 = vpack.c.bf16 %v441_v54, %v440_v53 }
  0x11   : > { %872 = vmatprep.mubr.f32.mxu0 %v282_v16  ;;  %983 = vmatpush3.bf16.msra.mxu0 %v980_v8  ;;  %v285_v48 = vld [vmem:[%s1186_s28 + $0x18] sm:$0xff]  ;;  %v286_v49 = vld [vmem:[%s1186_s28 + $0x20] sm:$0xff]  ;;  %v287_v50 = vld [vmem:[%s1186_s28 + $0x28] sm:$0xff] }
  0x12   : > { %985 = vmatprep.subr.bf16.mxu0 %v984_v19  ;;  %v288_v51 = vld [vmem:[%s1186_s28 + $0x30] sm:$0xff]  ;;  %v289_v52 = vld [vmem:[%s1186_s28 + $0x38] sm:$0xff]  ;;  %v563_v57 = vld [vmem:[%s1332_s5 + $0x8] sm:$0xff] }
  0x13   : > { %1015 = vmatpush3.bf16.msra.mxu1 %v1012_v23  ;;  %v564_v58 = vld [vmem:[%s1332_s5 + $0x10] sm:$0xff]  ;;  %v1036_v59 = vpack.c.bf16 %v563_v57, %v562_v56  ;;  %v565_v60 = vld [vmem:[%s1332_s5 + $0x18] sm:$0xff]  ;;  %v566_v62 = vld [vmem:[%s1332_s5 + $0x20] sm:$0xff] }
  0x14   : > { %1017 = vmatprep.subr.bf16.mxu1 %v1016_v29  ;;  %v1040_v61 = vpack.c.bf16 %v565_v60, %v564_v58  ;;  %v567_v63 = vld [vmem:[%s1332_s5 + $0x28] sm:$0xff]  ;;  %v568_v1 = vld [vmem:[%s1332_s5 + $0x30] sm:$0xff]  ;;  %v569_v2 = vld [vmem:[%s1332_s5 + $0x38] sm:$0xff] }
  0x15   : > { %987 = vmatpush3.bf16.msra.mxu0 %v984_v19  ;;  %v1044_v0 = vpack.c.bf16 %v567_v63, %v566_v62  ;;  %v1048_v3 = vpack.c.bf16 %v569_v2, %v568_v1  ;;  %v570_v4 = vld [vmem:[%s1332_s5 + $0x40] sm:$0xff]  ;;  %v571_v5 = vld [vmem:[%s1332_s5 + $0x48] sm:$0xff]  ;;  %v572_v7 = vld [vmem:[%s1332_s5 + $0x50] sm:$0xff] }
  0x16   : > { %989 = vmatprep.subr.bf16.mxu0 %v988_v26  ;;  %v1052_v6 = vpack.c.bf16 %v571_v5, %v570_v4  ;;  %v573_v8 = vld [vmem:[%s1332_s5 + $0x58] sm:$0xff]  ;;  %v574_v10 = vld [vmem:[%s1332_s5 + $0x60] sm:$0xff]  ;;  %v575_v11 = vld [vmem:[%s1332_s5 + $0x68] sm:$0xff] }
  0x17   : > { %1019 = vmatpush3.bf16.msra.mxu1 %v1016_v29  ;;  %v1056_v9 = vpack.c.bf16 %v573_v8, %v572_v7  ;;  %v1060_v12 = vpack.c.bf16 %v575_v11, %v574_v10  ;;  %v763_v13 = vld [vmem:[%s1329_s2] ss:$0 sm:$0xff]  ;;  %v577_v39 = vld [vmem:[%s1332_s5 + $0x78] sm:$0xff] }
  0x18   : > { %1021 = vmatprep.subr.bf16.mxu1 %v1020_v35  ;;  %v765_v2 = vld [vmem:[%s1333_s6] ss:$0 sm:$0xff] }
  0x19   : > { %991 = vmatpush3.bf16.msra.mxu0 %v988_v26 }
  0x1a   : > { %993 = vmatprep.subr.bf16.mxu0 %v992_v32 }
  0x1b   : > { %1023 = vmatpush3.bf16.msra.mxu1 %v1020_v35 }
  0x1c   : > { %1025 = vmatprep.subr.bf16.mxu1 %v1024_v41 }
  0x1d   : > { %995 = vmatpush3.bf16.msra.mxu0 %v992_v32 }
  0x1e   : > { %997 = vmatprep.subr.bf16.mxu0 %v996_v38 }
  0x1f   : > { %1027 = vmatpush3.bf16.msra.mxu1 %v1024_v41  ;;  %v764_v41 = vld [vmem:[%s1331_s4] ss:$0 sm:$0xff] }
  0x20   : > { %1029 = vmatprep.subr.bf16.mxu1 %v1028_v45 }
  0x21   : > { %999 = vmatpush3.bf16.msra.mxu0 %v996_v38  ;;  %v576_v38 = vld [vmem:[%s1332_s5 + $0x70] sm:$0xff] }
  0x22   : > { %1001 = vmatprep.subr.bf16.mxu0 %v1000_v44  ;;  %v1064_v40 = vpack.c.bf16 %v577_v39, %v576_v38 }
  0x23   : > { %1031 = vmatpush3.bf16.msra.mxu1 %v1028_v45 }
  0x24   : > { %1033 = vmatprep.subr.bf16.mxu1 %v1032_v55 }
  0x25   : > { %1003 = vmatpush3.bf16.msra.mxu0 %v1000_v44 }
  0x26   : > { %1037 = vmatprep.subr.bf16.mxu0 %v1036_v59 }
  0x27   : > { %1035 = vmatpush3.bf16.msra.mxu1 %v1032_v55 }
  0x28   : > { %873 = vmatmul.mubr.f32.vlgmr.msra.gmra.mrb[0].mxu0 %v283_v46  ;;  %1068 = vmatprep.subr.bf16.mxu1 %v1036_v59 }
  0x29   : > { %875 = vmatprep.mubr.f32.mxu0 %v284_v47  ;;  %1039 = vmatpush3.bf16.msra.mxu0 %v1036_v59 }
  0x2a   : > { %1041 = vmatprep.subr.bf16.mxu0 %v1040_v61 }
  0x2c   : > { %876 = vmatmul.mubr.f32.gmra.mrb[2].mxu0 %v285_v48 }
  0x2d   : > { %878 = vmatprep.mubr.f32.mxu0 %v286_v49  ;;  %1043 = vmatpush3.bf16.msra.mxu0 %v1040_v61 }
  0x2e   : > { %1045 = vmatprep.subr.bf16.mxu0 %v1044_v0 }
  0x30   : > { %879 = vmatmul.mubr.f32.gmra.mrb[4].mxu0 %v287_v50 }
  0x31   : > { %881 = vmatprep.mubr.f32.mxu0 %v288_v51  ;;  %1047 = vmatpush3.bf16.msra.mxu0 %v1044_v0 }
  0x32   : > { %1049 = vmatprep.subr.bf16.mxu0 %v1048_v3 }
  0x34   : > { %882 = vmatmul.mubr.f32.gmra.mrb[6].mxu0 %v289_v52 }
  0x35   : > { %1051 = vmatpush3.bf16.msra.mxu0 %v1048_v3 }
  0x36   : > { %1053 = vmatprep.subr.bf16.mxu0 %v1052_v6 }
  0x39   : > { %1055 = vmatpush3.bf16.msra.mxu0 %v1052_v6 }
  0x3a   : > { %1057 = vmatprep.subr.bf16.mxu0 %v1056_v9 }
  0x3d   : > { %1059 = vmatpush3.bf16.msra.mxu0 %v1056_v9 }
  0x3e   : > { %1061 = vmatprep.subr.bf16.mxu0 %v1060_v12 }
  0x41   : > { %1063 = vmatpush3.bf16.msra.mxu0 %v1060_v12 }
  0x42   : > { %1065 = vmatprep.subr.bf16.mxu0 %v1064_v40 }
  0x45   : > { %1067 = vmatpush3.bf16.msra.mxu0 %v1064_v40 }
  0xfb   : > { %v874_v14 = vpop.f32.mrb[0].mxu0 }
  0xfc   : > { %v385_v15 = vadd.f32 %v874_v14, %v763_v13  ;;  %v379_v16 = vpop.f32.mrb[1].mxu0 }
  0xfd   : > { %v380_v17 = vadd.f32 %v763_v13, %v379_v16 }
  0xfe   : > { %v419_v20 = vmax.f32 %v385_v15, 0.0 }
  0xff   : > { %v877_v18 = vpop.f32.mrb[2].mxu0  ;;  %v418_v19 = vmax.f32 %v380_v17, 0.0 }
 0x100   : > { %v395_v21 = vadd.f32 %v877_v18, %v763_v13  ;;  %v389_v22 = vpop.f32.mrb[3].mxu0 }
 0x101   : > { %v390_v23 = vadd.f32 %v763_v13, %v389_v22  ;;  %916 = vmatprep.mubr.f32.mxu1 %v418_v19 }
 0x102   : > { %917 = vmatmul.mubr.f32.vlgmr.msra.gmra.mrb[0].mxu1 %v419_v20  ;;  %v421_v26 = vmax.f32 %v395_v21, 0.0 }
 0x103   : > { %v420_v24 = vmax.f32 %v390_v23, 0.0  ;;  %v880_v25 = vpop.f32.mrb[4].mxu0  ;;  %1076 = vmatpush3.bf16.msra.mxu1 %v1036_v59 }
 0x104   : > { %v405_v27 = vadd.f32 %v880_v25, %v763_v13  ;;  %v399_v28 = vpop.f32.mrb[5].mxu0  ;;  %1069 = vmatprep.subr.bf16.mxu1 %v1040_v61 }
 0x105   : > { %v400_v29 = vadd.f32 %v763_v13, %v399_v28  ;;  %919 = vmatprep.mubr.f32.mxu1 %v420_v24 }
 0x106   : > { %920 = vmatmul.mubr.f32.gmra.mrb[2].mxu1 %v421_v26  ;;  %v423_v32 = vmax.f32 %v405_v27, 0.0 }
 0x107   : > { %v422_v30 = vmax.f32 %v400_v29, 0.0  ;;  %v883_v31 = vpop.f32.mrb[6].mxu0  ;;  %1077 = vmatpush3.bf16.msra.mxu1 %v1040_v61 }
 0x108   : > { %v415_v33 = vadd.f32 %v883_v31, %v763_v13  ;;  %v409_v34 = vpop.f32.mrb[7].mxu0  ;;  %1070 = vmatprep.subr.bf16.mxu1 %v1044_v0 }
 0x109   : > { %v410_v35 = vadd.f32 %v763_v13, %v409_v34  ;;  %922 = vmatprep.mubr.f32.mxu1 %v422_v30 }
 0x10a   : > { %923 = vmatmul.mubr.f32.gmra.mrb[4].mxu1 %v423_v32  ;;  %v425_v37 = vmax.f32 %v415_v33, 0.0 }
 0x10b   : > { %v424_v36 = vmax.f32 %v410_v35, 0.0  ;;  %1078 = vmatpush3.bf16.msra.mxu1 %v1044_v0 }
 0x10c   : > { %1071 = vmatprep.subr.bf16.mxu1 %v1048_v3 }
 0x10d   : > { %925 = vmatprep.mubr.f32.mxu1 %v424_v36 }
 0x10e   : > { %926 = vmatmul.mubr.f32.gmra.mrb[6].mxu1 %v425_v37 }
 0x10f   : > { %1079 = vmatpush3.bf16.msra.mxu1 %v1048_v3 }
 0x110   : > { %1072 = vmatprep.subr.bf16.mxu1 %v1052_v6 }
 0x113   : > { %1080 = vmatpush3.bf16.msra.mxu1 %v1052_v6 }
 0x114   : > { %1073 = vmatprep.subr.bf16.mxu1 %v1056_v9 }
 0x117   : > { %1081 = vmatpush3.bf16.msra.mxu1 %v1056_v9 }
 0x118   : > { %1074 = vmatprep.subr.bf16.mxu1 %v1060_v12 }
 0x11b   : > { %1082 = vmatpush3.bf16.msra.mxu1 %v1060_v12 }
 0x11c   : > { %1075 = vmatprep.subr.bf16.mxu1 %v1064_v40 }
 0x11f   : > { %1083 = vmatpush3.bf16.msra.mxu1 %v1064_v40 }
 0x1d5   : > { %v918_v42 = vpop.f32.mrb[0].mxu1 }
 0x1d6   : > { %v521_v43 = vadd.f32 %v918_v42, %v764_v41  ;;  %v515_v44 = vpop.f32.mrb[1].mxu1 }
 0x1d7   : > { %v516_v45 = vadd.f32 %v764_v41, %v515_v44 }
 0x1d8   : > { %v555_v48 = vmax.f32 %v521_v43, 0.0 }
 0x1d9   : > { %v554_v46 = vmax.f32 %v516_v45, 0.0  ;;  %v921_v47 = vpop.f32.mrb[2].mxu1 }
 0x1da   : > { %v531_v49 = vadd.f32 %v921_v47, %v764_v41  ;;  %v525_v50 = vpop.f32.mrb[3].mxu1 }
 0x1db   : > { %v526_v51 = vadd.f32 %v764_v41, %v525_v50  ;;  %960 = vmatprep.mubr.f32.mxu0 %v554_v46 }
 0x1dc   : > { %961 = vmatmul.mubr.f32.vlgmr.msra.gmra.mrb[8].mxu0 %v555_v48  ;;  %v557_v54 = vmax.f32 %v531_v49, 0.0 }
 0x1dd   : > { %v556_v52 = vmax.f32 %v526_v51, 0.0  ;;  %v924_v53 = vpop.f32.mrb[4].mxu1 }
 0x1de   : > { %v541_v55 = vadd.f32 %v924_v53, %v764_v41  ;;  %v535_v56 = vpop.f32.mrb[5].mxu1 }
 0x1df   : > { %v536_v57 = vadd.f32 %v764_v41, %v535_v56  ;;  %963 = vmatprep.mubr.f32.mxu0 %v556_v52 }
 0x1e0   : > { %964 = vmatmul.mubr.f32.gmra.mrb[10].mxu0 %v557_v54  ;;  %v559_v60 = vmax.f32 %v541_v55, 0.0 }
 0x1e1   : > { %v558_v58 = vmax.f32 %v536_v57, 0.0  ;;  %v927_v59 = vpop.f32.mrb[6].mxu1 }
 0x1e2   : > { %v551_v61 = vadd.f32 %v927_v59, %v764_v41  ;;  %v545_v62 = vpop.f32.mrb[7].mxu1 }
 0x1e3   : > { %v546_v63 = vadd.f32 %v764_v41, %v545_v62  ;;  %966 = vmatprep.mubr.f32.mxu1 %v558_v58 }
 0x1e4   : > { %967 = vmatmul.mubr.f32.vlgmr.msra.gmra.mrb[8].mxu1 %v559_v60  ;;  %v561_v1 = vmax.f32 %v551_v61, 0.0 }
 0x1e5   : > { %v560_v0 = vmax.f32 %v546_v63, 0.0 }
 0x1e7   : > { %969 = vmatprep.mubr.f32.mxu1 %v560_v0 }
 0x1e8   : > { %970 = vmatmul.mubr.f32.gmra.mrb[10].mxu1 %v561_v1 }
 0x2af   : > { %v962_v3 = vpop.f32.mrb[8].mxu0 }
 0x2b0   : > { %v657_v4 = vadd.f32 %v962_v3, %v765_v2  ;;  %v651_v5 = vpop.f32.mrb[9].mxu0 }
 0x2b1   : > { %v652_v6 = vadd.f32 %v765_v2, %v651_v5 }
 0x2b2   : > { %691 = vst [vmem:[%s280_s13 + $0x8] sm:$0xff] %v657_v4 }
 0x2b3   : > { %690 = vst [vmem:[%s280_s13] sm:$0xff] %v652_v6  ;;  %v965_v7 = vpop.f32.mrb[10].mxu0 }
 0x2b4   : > { %v667_v8 = vadd.f32 %v965_v7, %v765_v2  ;;  %v661_v9 = vpop.f32.mrb[11].mxu0 }
 0x2b5   : > { %v662_v10 = vadd.f32 %v765_v2, %v661_v9 }
 0x2b6   : > { %693 = vst [vmem:[%s280_s13 + $0x18] sm:$0xff] %v667_v8 }
 0x2b7   : > { %692 = vst [vmem:[%s280_s13 + $0x10] sm:$0xff] %v662_v10  ;;  %v968_v11 = vpop.f32.mrb[8].mxu1 }
 0x2b8   : > { %v677_v12 = vadd.f32 %v968_v11, %v765_v2  ;;  %v671_v13 = vpop.f32.mrb[9].mxu1 }
 0x2b9   : > { %v672_v14 = vadd.f32 %v765_v2, %v671_v13 }
 0x2ba   : > { %695 = vst [vmem:[%s280_s13 + $0x28] sm:$0xff] %v677_v12 }
 0x2bb   : > { %694 = vst [vmem:[%s280_s13 + $0x20] sm:$0xff] %v672_v14  ;;  %v971_v15 = vpop.f32.mrb[10].mxu1 }
 0x2bc   : > { %v687_v16 = vadd.f32 %v971_v15, %v765_v2  ;;  %v681_v17 = vpop.f32.mrb[11].mxu1 }
 0x2bd   : > { %v682_v18 = vadd.f32 %v765_v2, %v681_v17 }
 0x2be   : > { %697 = vst [vmem:[%s280_s13 + $0x38] sm:$0xff] %v687_v16 }
 0x2bf   : > { %696 = vst [vmem:[%s280_s13 + $0x30] sm:$0xff] %v682_v18 }
 0x2c0 PF: > { %s17_s24 = sadd.s32 1, %s1098_s24  }
 0x2c1   : > { %p14_p4 = scmp.ge.s32.totalorder %s17_s24, 4  }
 0x2c3   :  { %16 = sbr.rel (!%p14_p4) target bundleno = 1 (0x1), region = 78 }

</bundles_post_ra>
